<compile_context>
chip_gen: v7x
topology: tpu7x:2x2x1
jax: 0.10.0
libtpu: 0.0.40
codegen_flags: <defaults>
</compile_context>

<pallas_src>
import functools

import jax
import jax.numpy as jnp
from jax import lax
from jax.experimental import pallas as pl
from jax.experimental.pallas import tpu as pltpu


MSG_PAD = 8     # sublane-aligned per-step message width (zero-padded)
OUT_PAD = 128   # lane-padded width of the target head / output slab


def _round_up(x, m):
    return ((x + m - 1) // m) * m


def _param_layout(context_size, hidden):
    """Row offsets inside the packed parameter slab (all multiples of 8)."""
    ctx_pad = _round_up(context_size, 8)
    gate_w = max(3 * hidden, OUT_PAD)       # lanes: packed [i | g | o] gate columns
    row_wc = 0                              # rows [0, ctx_pad)        W_ctx
    row_wm = ctx_pad                        # rows [+0, +MSG_PAD)      W_msg (rows >= max_msg zero)
    row_b = row_wm + MSG_PAD                # row                      b_ih + b_hh (i|g|o)
    row_wh = row_b + 8                      # rows [+0, +hidden)       W_h (recurrence via concat)
    row_wt = _round_up(row_wh + hidden, 8)  # rows [+0, +hidden)       W_target^T (OUT_PAD cols)
    row_bt = _round_up(row_wt + hidden, 8)  # row                      b_target (+ -1e30 pad mask)
    n_rows = row_bt + 8
    return ctx_pad, gate_w, row_wc, row_wm, row_b, row_wh, row_wt, row_bt, n_rows


def receiver_kernel(ctx_ref, msgs_ref, params_ref, gumbel_ref, out_ref, *,
                    n_steps, hidden):
    f32 = jnp.float32
    bb = ctx_ref.shape[0]
    ctx_pad = ctx_ref.shape[1]
    (_, _, row_wc, row_wm, row_b, row_wh, row_wt, row_bt, _) = _param_layout(ctx_pad, hidden)

    # Static, sublane/lane-aligned slices of the packed parameter slab.
    w_ctx = params_ref[row_wc:row_wc + ctx_pad, :]          # [ctx_pad, 3H]
    w_msg = params_ref[row_wm:row_wm + MSG_PAD, :]          # [MSG_PAD, 3H] (pad rows are zero)
    b_lstm = params_ref[row_b:row_b + 1, :]                 # [1, 3H]  (b_ih + b_hh, gates i|g|o)
    w_h = params_ref[row_wh:row_wh + hidden, :]             # [H, 3H]
    w_t = params_ref[row_wt:row_wt + hidden, 0:OUT_PAD]     # [H, OUT_PAD]
    b_t = params_ref[row_bt:row_bt + 1, 0:OUT_PAD]          # [1, OUT_PAD] (-1e30 in padded cols)

    # Context (+ bias) contribution to the gates: one small MXU push, and the
    # only value kept live across the unrolled recurrence (~2 vregs).
    ctx_gates = jnp.dot(ctx_ref[...], w_ctx, preferred_element_type=f32) + b_lstm
    msgs = msgs_ref[...]                                    # [BB, T*MSG_PAD]

    c = None
    h = None
    for t in range(n_steps):                                # tiny T: static unroll
        msg_t = msgs[:, t * MSG_PAD:(t + 1) * MSG_PAD]      # [BB, MSG_PAD]
        g = ctx_gates + jnp.dot(msg_t, w_msg, preferred_element_type=f32)
        if t > 0:                                           # step 0: h == 0, skip the dot
            g = g + jnp.dot(h, w_h, preferred_element_type=f32)
        i_gate = jax.nn.sigmoid(g[:, 0:hidden])
        g_gate = jnp.tanh(g[:, hidden:2 * hidden])
        # forget gate dropped: it multiplies the zero initial cell state
        # (the reference re-initialises the LSTMCell state every call).
        c = i_gate * g_gate                                 # "output" in the reference
        if t + 1 < n_steps:                                 # last step only needs c
            o_gate = jax.nn.sigmoid(g[:, 2 * hidden:3 * hidden])
            h = o_gate * jnp.tanh(c)                        # fed back via concatenation

    # Target head on the final cell state; padded columns carry a -1e30 bias.
    logits = jnp.dot(c, w_t, preferred_element_type=f32) + b_t      # [BB, OUT_PAD]
    m = jnp.max(logits, axis=1, keepdims=True)
    e = jnp.exp(logits - m)
    probs = e / jnp.sum(e, axis=1, keepdims=True)                   # padded cols -> exactly 0

    # Categorical sample via Gumbel-max on the logits (shift-invariant).
    scores = logits + gumbel_ref[...]
    smax = jnp.max(scores, axis=1, keepdims=True)
    cols = lax.broadcasted_iota(jnp.int32, (bb, OUT_PAD), 1)
    idx = jnp.min(jnp.where(scores >= smax, cols, jnp.int32(OUT_PAD)),
                  axis=1, keepdims=True)                            # first argmax column

    # Single lane-dense output slab: probs in cols 0:n_objs, sample in col 127.
    out_ref[...] = jnp.where(cols == (OUT_PAD - 1), idx.astype(f32), probs)


def receiver_forward(packed_params, contexts, msgs, key, *, n_objs,
                     max_msg=2, hidden_size=64, batch_block=8):
    """Pallas forward pass of RNNReceiver.

    msgs: list of [batch, m<=max_msg] arrays (zero-padded to max_msg, like the
    reference forward).  Returns (probs [batch, n_objs] f32, sample [batch] i32).
    """
    batch, context_size = contexts.shape
    n_steps = len(msgs)
    assert n_steps >= 1 and n_objs <= OUT_PAD - 1 and max_msg <= MSG_PAD
    assert all(m.shape[0] == batch and m.shape[1] <= max_msg for m in msgs)

    ctx_pad, gate_w, *_, n_rows = _param_layout(context_size, hidden_size)
    assert packed_params.shape == (n_rows, gate_w)

    bpad = _round_up(batch, batch_block)

    # Lane-padded context slab (contexts stored ONCE, not replicated per step).
    ctx_slab = jnp.zeros((bpad, ctx_pad), jnp.float32)
    ctx_slab = ctx_slab.at[:batch, :context_size].set(contexts.astype(jnp.float32))

    # All messages packed side by side: a single concatenate, MSG_PAD cols/step.
    msg_slab = jnp.concatenate(
        [jnp.pad(m.astype(jnp.float32),
                 ((0, bpad - batch), (0, MSG_PAD - m.shape[1]))) for m in msgs],
        axis=1)                                                    # [bpad, T*MSG_PAD]

    # One lane-dense noise draw for Gumbel-max sampling.
    gumbel = jax.random.gumbel(key, (bpad, OUT_PAD), jnp.float32)

    kernel = functools.partial(receiver_kernel, n_steps=n_steps, hidden=hidden_size)
    grid = (bpad // batch_block,)
    slab = pl.pallas_call(
        kernel,
        out_shape=jax.ShapeDtypeStruct((bpad, OUT_PAD), jnp.float32),
        grid_spec=pltpu.PrefetchScalarGridSpec(
            num_scalar_prefetch=0,
            grid=grid,
            in_specs=[
                pl.BlockSpec((batch_block, ctx_pad), lambda i: (i, 0)),
                pl.BlockSpec((batch_block, n_steps * MSG_PAD), lambda i: (i, 0)),
                # Constant index_map: the parameter slab is DMA'd once and
                # stays VMEM-resident across all batch blocks.
                pl.BlockSpec((n_rows, gate_w), lambda i: (0, 0)),
                pl.BlockSpec((batch_block, OUT_PAD), lambda i: (i, 0)),
            ],
            out_specs=pl.BlockSpec((batch_block, OUT_PAD), lambda i: (i, 0)),
        ),
        compiler_params=pltpu.CompilerParams(
            dimension_semantics=("parallel",)),   # dual-TC v7x: blocks split across cores
    )(ctx_slab, msg_slab, packed_params, gumbel)

    probs = slab[:batch, :n_objs]
    sample = slab[:batch, OUT_PAD - 1].astype(jnp.int32)
    return probs, sample


def pack_receiver_params(raw, context_size, n_objs, max_msg, hidden_size):
    """Pack params into one lane-dense slab: gate columns reordered
    (i,f,g,o) -> (i,g,o); weight_hh and the forget gate are dropped because
    they only ever touch the zero (h0, c0) the reference re-creates each step."""
    H = hidden_size
    (ctx_pad, gate_w, row_wc, row_wm, row_b, row_wh, row_wt, row_bt,
     n_rows) = _param_layout(context_size, H)

    def igo(x):   # [..., 4H] -> [..., 3H]: keep input / cell / output gate cols
        return jnp.concatenate(
            [x[..., 0:H], x[..., 2 * H:3 * H], x[..., 3 * H:4 * H]], axis=-1)

    w_ih_t = raw["w_ih"].T                                   # [in_size, 4H]
    w_ctx = igo(w_ih_t[:context_size])                       # [ctx, 3H]
    w_msg = igo(w_ih_t[context_size:context_size + max_msg])  # [max_msg, 3H]
    w_hid = igo(w_ih_t[context_size + max_msg:])             # [H, 3H]
    b_lstm = igo(raw["b_ih"] + raw["b_hh"])                  # [3H]

    packed = jnp.zeros((n_rows, gate_w), jnp.float32)
    packed = packed.at[row_wc:row_wc + context_size, 0:3 * H].set(w_ctx)
    packed = packed.at[row_wm:row_wm + max_msg, 0:3 * H].set(w_msg)
    packed = packed.at[row_b, 0:3 * H].set(b_lstm)
    packed = packed.at[row_wh:row_wh + H, 0:3 * H].set(w_hid)
    packed = packed.at[row_wt:row_wt + H, 0:n_objs].set(raw["w_t"].T)
    bt_row = jnp.full((OUT_PAD,), -1e30, jnp.float32).at[:n_objs].set(raw["b_t"])
    packed = packed.at[row_bt, 0:OUT_PAD].set(bt_row)
    return packed


def init_receiver_params(key, context_size, n_objs, max_msg=2, hidden_size=64):
    """PyTorch-style init; returns (raw params for the reference, packed slab)."""
    in_size = context_size + max_msg + hidden_size
    k1, k2, k3, k4, k5, k6 = jax.random.split(key, 6)
    bound = 1.0 / float(jnp.sqrt(float(hidden_size)))
    raw = dict(
        w_ih=jax.random.uniform(k1, (4 * hidden_size, in_size), jnp.float32, -bound, bound),
        w_hh=jax.random.uniform(k2, (4 * hidden_size, hidden_size), jnp.float32, -bound, bound),
        b_ih=jax.random.uniform(k3, (4 * hidden_size,), jnp.float32, -bound, bound),
        b_hh=jax.random.uniform(k4, (4 * hidden_size,), jnp.float32, -bound, bound),
        w_t=jax.random.uniform(k5, (n_objs, hidden_size), jnp.float32, -bound, bound),
        b_t=jax.random.uniform(k6, (n_objs,), jnp.float32, -bound, bound),
    )
    packed = pack_receiver_params(raw, context_size, n_objs, max_msg, hidden_size)
    return raw, packed


def receiver_reference(raw, contexts, msgs, *, max_msg, hidden_size):
    """Pure-JAX mirror of the PyTorch forward (incl. inert w_hh / forget gate).
    Returns the softmax probabilities of the final target logits."""
    H = hidden_size
    B = contexts.shape[0]
    hp = jax.lax.Precision.HIGHEST
    hidden = jnp.zeros((B, H), jnp.float32)
    output = None
    for msg in msgs:
        if msg.shape[1] < max_msg:
            msg = jnp.concatenate(
                [msg, jnp.zeros((B, max_msg - msg.shape[1]), jnp.float32)], axis=1)
        combined = jnp.concatenate([contexts, msg, hidden], axis=1)
        h0 = jnp.zeros((B, H), jnp.float32)
        c0 = jnp.zeros((B, H), jnp.float32)
        gates = (jnp.dot(combined, raw["w_ih"].T, precision=hp) + raw["b_ih"]
                 + jnp.dot(h0, raw["w_hh"].T, precision=hp) + raw["b_hh"])
        i = jax.nn.sigmoid(gates[:, 0:H])
        f = jax.nn.sigmoid(gates[:, H:2 * H])
        g = jnp.tanh(gates[:, 2 * H:3 * H])
        o = jax.nn.sigmoid(gates[:, 3 * H:4 * H])
        c = f * c0 + i * g
        h = o * jnp.tanh(c)
        hidden, output = h, c          # matches `hidden, output = self.lstm(combined)`
    logits = jnp.dot(output, raw["w_t"].T, precision=hp) + raw["b_t"]
    return jax.nn.softmax(logits, axis=1)


if __name__ == "__main__":
    context_size = 32
    n_dims = 8          # unused by RNNReceiver (kept for constructor parity)
    n_objs = 5
    max_msg = 2
    hidden_size = 64
    batch = 16
    n_steps = 3

    key = jax.random.PRNGKey(0)
    kp, kc, km, ks = jax.random.split(key, 4)

    raw, packed_params = init_receiver_params(kp, context_size, n_objs, max_msg, hidden_size)
    contexts = jax.random.normal(kc, (batch, context_size), jnp.float32)

    # One-hot style messages; the last one is narrower than max_msg to exercise
    # the in-forward zero padding of the reference module.
    mk = jax.random.split(km, n_steps)
    msgs = [jax.nn.one_hot(jax.random.randint(mk[t], (batch,), 0, max_msg),
                           max_msg, dtype=jnp.float32)
            for t in range(n_steps - 1)]
    msgs.append(jnp.ones((batch, 1), jnp.float32))

    probs, sample = jax.block_until_ready(
        receiver_forward(packed_params, contexts, msgs, ks, n_objs=n_objs,
                         max_msg=max_msg, hidden_size=hidden_size))

    # Regression check against a pure-JAX mirror of the PyTorch forward.
    probs_ref = receiver_reference(raw, contexts, msgs, max_msg=max_msg,
                                   hidden_size=hidden_size)

    assert probs.shape == (batch, n_objs)
    assert jnp.allclose(jnp.sum(probs, axis=1), 1.0, atol=1e-5)
    assert bool(jnp.all(probs >= 0.0))
    assert jnp.allclose(probs, probs_ref, atol=2e-2), \
        float(jnp.max(jnp.abs(probs - probs_ref)))
    assert sample.shape == (batch,)
    assert bool(jnp.all((sample >= 0) & (sample < n_objs)))

    print("KERNEL_OK")
</pallas_src>

<mosaic_0001>
module attributes {stable_mosaic.version = 11 : i64} {
  func.func @receiver_kernel(%arg0: i32, %arg1: memref<8x32xf32, #tpu.memory_space<vmem>>, %arg2: memref<8x24xf32, #tpu.memory_space<vmem>>, %arg3: memref<184x192xf32, #tpu.memory_space<vmem>>, %arg4: memref<8x128xf32, #tpu.memory_space<vmem>>, %arg5: memref<8x128xf32, #tpu.memory_space<vmem>>) attributes {dimension_semantics = [#tpu.dimension_semantics<parallel>], iteration_bounds = array<i64: 2>, scalar_prefetch = 0 : i64, scratch_operands = 0 : i64, tpu.core_type = #tpu.core_type<tc>, window_params = [{transform_indices = @transform_0, window_bounds = array<i64: 8, 32>}, {transform_indices = @transform_1, window_bounds = array<i64: 8, 24>}, {pipeline_mode = #tpu.pipeline_mode<synchronous>, transform_indices = @transform_2, window_bounds = array<i64: 184, 192>}, {transform_indices = @transform_3, window_bounds = array<i64: 8, 128>}, {transform_indices = @transform_4, window_bounds = array<i64: 8, 128>}]} {
    %c0 = arith.constant 0 : index
    %c0_0 = arith.constant 0 : index
    %0 = vector.load %arg3[%c0, %c0_0] : memref<184x192xf32, #tpu.memory_space<vmem>>, vector<32x192xf32>
    %c32 = arith.constant 32 : index
    %c0_1 = arith.constant 0 : index
    %1 = vector.load %arg3[%c32, %c0_1] : memref<184x192xf32, #tpu.memory_space<vmem>>, vector<8x192xf32>
    %c40 = arith.constant 40 : index
    %c0_2 = arith.constant 0 : index
    %2 = vector.load %arg3[%c40, %c0_2] : memref<184x192xf32, #tpu.memory_space<vmem>>, vector<1x192xf32>
    %c48 = arith.constant 48 : index
    %c0_3 = arith.constant 0 : index
    %3 = vector.load %arg3[%c48, %c0_3] : memref<184x192xf32, #tpu.memory_space<vmem>>, vector<64x192xf32>
    %c112 = arith.constant 112 : index
    %c0_4 = arith.constant 0 : index
    %4 = vector.load %arg3[%c112, %c0_4] : memref<184x192xf32, #tpu.memory_space<vmem>>, vector<64x128xf32>
    %c176 = arith.constant 176 : index
    %c0_5 = arith.constant 0 : index
    %5 = vector.load %arg3[%c176, %c0_5] : memref<184x192xf32, #tpu.memory_space<vmem>>, vector<1x128xf32>
    %c0_6 = arith.constant 0 : index
    %c0_7 = arith.constant 0 : index
    %6 = vector.load %arg1[%c0_6, %c0_7] : memref<8x32xf32, #tpu.memory_space<vmem>>, vector<8x32xf32>
    %cst = arith.constant dense<0.000000e+00> : vector<8x192xf32>
    %7 = tpu.matmul %6, %0, %cst {dimension_numbers = #tpu.dot_dimension_numbers<[1], [0], [0], [1], [0, 0, 1, 1], [], []>} : vector<8x32xf32>, vector<32x192xf32>, vector<8x192xf32> -> vector<8x192xf32>
    %8 = vector.broadcast %2 : vector<1x192xf32> to vector<8x192xf32>
    %9 = arith.addf %7, %8 : vector<8x192xf32>
    %c0_8 = arith.constant 0 : index
    %c0_9 = arith.constant 0 : index
    %10 = vector.load %arg2[%c0_8, %c0_9] : memref<8x24xf32, #tpu.memory_space<vmem>>, vector<8x24xf32>
    %11 = vector.extract_strided_slice %10 {offsets = [0, 0], sizes = [8, 8], strides = [1, 1]} : vector<8x24xf32> to vector<8x8xf32>
    %cst_10 = arith.constant dense<0.000000e+00> : vector<8x192xf32>
    %12 = tpu.matmul %11, %1, %cst_10 {dimension_numbers = #tpu.dot_dimension_numbers<[1], [0], [0], [1], [0, 0, 1, 1], [], []>} : vector<8x8xf32>, vector<8x192xf32>, vector<8x192xf32> -> vector<8x192xf32>
    %13 = arith.addf %9, %12 : vector<8x192xf32>
    %14 = vector.extract_strided_slice %13 {offsets = [0, 0], sizes = [8, 64], strides = [1, 1]} : vector<8x192xf32> to vector<8x64xf32>
    %15 = arith.negf %14 : vector<8x64xf32>
    %16 = math.exp %15 : vector<8x64xf32>
    %cst_11 = arith.constant 1.000000e+00 : f32
    %17 = vector.broadcast %cst_11 : f32 to vector<8x64xf32>
    %18 = arith.addf %17, %16 : vector<8x64xf32>
    %19 = arith.divf %17, %18 : vector<8x64xf32>
    %20 = vector.extract_strided_slice %13 {offsets = [0, 64], sizes = [8, 64], strides = [1, 1]} : vector<8x192xf32> to vector<8x64xf32>
    %21 = math.tanh %20 : vector<8x64xf32>
    %22 = arith.mulf %19, %21 : vector<8x64xf32>
    %23 = vector.extract_strided_slice %13 {offsets = [0, 128], sizes = [8, 64], strides = [1, 1]} : vector<8x192xf32> to vector<8x64xf32>
    %24 = arith.negf %23 : vector<8x64xf32>
    %25 = math.exp %24 : vector<8x64xf32>
    %cst_12 = arith.constant 1.000000e+00 : f32
    %26 = vector.broadcast %cst_12 : f32 to vector<8x64xf32>
    %27 = arith.addf %26, %25 : vector<8x64xf32>
    %28 = arith.divf %26, %27 : vector<8x64xf32>
    %29 = math.tanh %22 : vector<8x64xf32>
    %30 = arith.mulf %28, %29 : vector<8x64xf32>
    %31 = vector.extract_strided_slice %10 {offsets = [0, 8], sizes = [8, 8], strides = [1, 1]} : vector<8x24xf32> to vector<8x8xf32>
    %cst_13 = arith.constant dense<0.000000e+00> : vector<8x192xf32>
    %32 = tpu.matmul %31, %1, %cst_13 {dimension_numbers = #tpu.dot_dimension_numbers<[1], [0], [0], [1], [0, 0, 1, 1], [], []>} : vector<8x8xf32>, vector<8x192xf32>, vector<8x192xf32> -> vector<8x192xf32>
    %33 = arith.addf %9, %32 : vector<8x192xf32>
    %cst_14 = arith.constant dense<0.000000e+00> : vector<8x192xf32>
    %34 = tpu.matmul %30, %3, %cst_14 {dimension_numbers = #tpu.dot_dimension_numbers<[1], [0], [0], [1], [0, 0, 1, 1], [], []>} : vector<8x64xf32>, vector<64x192xf32>, vector<8x192xf32> -> vector<8x192xf32>
    %35 = arith.addf %33, %34 : vector<8x192xf32>
    %36 = vector.extract_strided_slice %35 {offsets = [0, 0], sizes = [8, 64], strides = [1, 1]} : vector<8x192xf32> to vector<8x64xf32>
    %37 = arith.negf %36 : vector<8x64xf32>
    %38 = math.exp %37 : vector<8x64xf32>
    %cst_15 = arith.constant 1.000000e+00 : f32
    %39 = vector.broadcast %cst_15 : f32 to vector<8x64xf32>
    %40 = arith.addf %39, %38 : vector<8x64xf32>
    %41 = arith.divf %39, %40 : vector<8x64xf32>
    %42 = vector.extract_strided_slice %35 {offsets = [0, 64], sizes = [8, 64], strides = [1, 1]} : vector<8x192xf32> to vector<8x64xf32>
    %43 = math.tanh %42 : vector<8x64xf32>
    %44 = arith.mulf %41, %43 : vector<8x64xf32>
    %45 = vector.extract_strided_slice %35 {offsets = [0, 128], sizes = [8, 64], strides = [1, 1]} : vector<8x192xf32> to vector<8x64xf32>
    %46 = arith.negf %45 : vector<8x64xf32>
    %47 = math.exp %46 : vector<8x64xf32>
    %cst_16 = arith.constant 1.000000e+00 : f32
    %48 = vector.broadcast %cst_16 : f32 to vector<8x64xf32>
    %49 = arith.addf %48, %47 : vector<8x64xf32>
    %50 = arith.divf %48, %49 : vector<8x64xf32>
    %51 = math.tanh %44 : vector<8x64xf32>
    %52 = arith.mulf %50, %51 : vector<8x64xf32>
    %53 = vector.extract_strided_slice %10 {offsets = [0, 16], sizes = [8, 8], strides = [1, 1]} : vector<8x24xf32> to vector<8x8xf32>
    %cst_17 = arith.constant dense<0.000000e+00> : vector<8x192xf32>
    %54 = tpu.matmul %53, %1, %cst_17 {dimension_numbers = #tpu.dot_dimension_numbers<[1], [0], [0], [1], [0, 0, 1, 1], [], []>} : vector<8x8xf32>, vector<8x192xf32>, vector<8x192xf32> -> vector<8x192xf32>
    %55 = arith.addf %9, %54 : vector<8x192xf32>
    %cst_18 = arith.constant dense<0.000000e+00> : vector<8x192xf32>
    %56 = tpu.matmul %52, %3, %cst_18 {dimension_numbers = #tpu.dot_dimension_numbers<[1], [0], [0], [1], [0, 0, 1, 1], [], []>} : vector<8x64xf32>, vector<64x192xf32>, vector<8x192xf32> -> vector<8x192xf32>
    %57 = arith.addf %55, %56 : vector<8x192xf32>
    %58 = vector.extract_strided_slice %57 {offsets = [0, 0], sizes = [8, 64], strides = [1, 1]} : vector<8x192xf32> to vector<8x64xf32>
    %59 = arith.negf %58 : vector<8x64xf32>
    %60 = math.exp %59 : vector<8x64xf32>
    %cst_19 = arith.constant 1.000000e+00 : f32
    %61 = vector.broadcast %cst_19 : f32 to vector<8x64xf32>
    %62 = arith.addf %61, %60 : vector<8x64xf32>
    %63 = arith.divf %61, %62 : vector<8x64xf32>
    %64 = vector.extract_strided_slice %57 {offsets = [0, 64], sizes = [8, 64], strides = [1, 1]} : vector<8x192xf32> to vector<8x64xf32>
    %65 = math.tanh %64 : vector<8x64xf32>
    %66 = arith.mulf %63, %65 : vector<8x64xf32>
    %cst_20 = arith.constant dense<0.000000e+00> : vector<8x128xf32>
    %67 = tpu.matmul %66, %4, %cst_20 {dimension_numbers = #tpu.dot_dimension_numbers<[1], [0], [0], [1], [0, 0, 1, 1], [], []>} : vector<8x64xf32>, vector<64x128xf32>, vector<8x128xf32> -> vector<8x128xf32>
    %68 = vector.broadcast %5 : vector<1x128xf32> to vector<8x128xf32>
    %69 = arith.addf %67, %68 : vector<8x128xf32>
    %cst_21 = arith.constant dense<0xFF800000> : vector<8xf32>
    %70 = vector.multi_reduction <maximumf>, %69, %cst_21 [1] : vector<8x128xf32> to vector<8xf32>
    %71 = vector.shape_cast %70 : vector<8xf32> to vector<8x1xf32>
    %72 = vector.broadcast %71 : vector<8x1xf32> to vector<8x128xf32>
    %73 = arith.subf %69, %72 : vector<8x128xf32>
    %74 = math.exp %73 : vector<8x128xf32>
    %cst_22 = arith.constant dense<0.000000e+00> : vector<8xf32>
    %75 = vector.multi_reduction <add>, %74, %cst_22 [1] : vector<8x128xf32> to vector<8xf32>
    %76 = vector.shape_cast %75 : vector<8xf32> to vector<8x1xf32>
    %77 = vector.broadcast %76 : vector<8x1xf32> to vector<8x128xf32>
    %78 = arith.divf %74, %77 : vector<8x128xf32>
    %c0_23 = arith.constant 0 : index
    %c0_24 = arith.constant 0 : index
    %79 = vector.load %arg4[%c0_23, %c0_24] : memref<8x128xf32, #tpu.memory_space<vmem>>, vector<8x128xf32>
    %80 = arith.addf %69, %79 : vector<8x128xf32>
    %cst_25 = arith.constant dense<0xFF800000> : vector<8xf32>
    %81 = vector.multi_reduction <maximumf>, %80, %cst_25 [1] : vector<8x128xf32> to vector<8xf32>
    %82 = vector.shape_cast %81 : vector<8xf32> to vector<8x1xf32>
    %83 = tpu.iota {dimensions = array<i32: 1>} : vector<8x128xi32>
    %84 = vector.broadcast %82 : vector<8x1xf32> to vector<8x128xf32>
    %85 = arith.cmpf oge, %80, %84 : vector<8x128xf32>
    %c128_i32 = arith.constant 128 : i32
    %86 = vector.broadcast %c128_i32 : i32 to vector<8x128xi32>
    %87 = arith.select %85, %83, %86 : vector<8x128xi1>, vector<8x128xi32>
    %cst_26 = arith.constant dense<2147483647> : vector<8xi32>
    %88 = vector.multi_reduction <minsi>, %87, %cst_26 [1] : vector<8x128xi32> to vector<8xi32>
    %89 = vector.shape_cast %88 : vector<8xi32> to vector<8x1xi32>
    %c127_i32 = arith.constant 127 : i32
    %90 = vector.broadcast %c127_i32 : i32 to vector<8x128xi32>
    %91 = arith.cmpi eq, %83, %90 : vector<8x128xi32>
    %92 = arith.sitofp %89 : vector<8x1xi32> to vector<8x1xf32>
    %93 = vector.shape_cast %92 : vector<8x1xf32> to vector<8x1xf32>
    %94 = vector.broadcast %93 : vector<8x1xf32> to vector<8x128xf32>
    %95 = arith.select %91, %94, %78 : vector<8x128xi1>, vector<8x128xf32>
    %c0_27 = arith.constant 0 : index
    %c0_28 = arith.constant 0 : index
    %96 = vector.load %arg5[%c0_27, %c0_28] : memref<8x128xf32, #tpu.memory_space<vmem>>, vector<8x128xf32>
    tpu.vector_store %arg5[%c0_27, %c0_28], %95 {strides = array<i32>} : memref<8x128xf32, #tpu.memory_space<vmem>>, vector<8x128xf32>,
    return
  }
  func.func @transform_0(%arg0: i32) -> (i32, i32) {
    %c0_i32 = arith.constant 0 : i32
    %c0_i32_0 = arith.constant 0 : i32
    return %arg0, %c0_i32 : i32, i32
  }
  func.func @transform_1(%arg0: i32) -> (i32, i32) {
    %c0_i32 = arith.constant 0 : i32
    %c0_i32_0 = arith.constant 0 : i32
    return %arg0, %c0_i32 : i32, i32
  }
  func.func @transform_2(%arg0: i32) -> (i32, i32) {
    %c0_i32 = arith.constant 0 : i32
    %c0_i32_0 = arith.constant 0 : i32
    %c0_i32_1 = arith.constant 0 : i32
    return %c0_i32, %c0_i32_0 : i32, i32
  }
  func.func @transform_3(%arg0: i32) -> (i32, i32) {
    %c0_i32 = arith.constant 0 : i32
    %c0_i32_0 = arith.constant 0 : i32
    return %arg0, %c0_i32 : i32, i32
  }
  func.func @transform_4(%arg0: i32) -> (i32, i32) {
    %c0_i32 = arith.constant 0 : i32
    %c0_i32_0 = arith.constant 0 : i32
    return %arg0, %c0_i32 : i32, i32
  }
}

</mosaic_0001>

<bundles_post_ra>
// kernel: tpu_custom_call.1
= control target key start
LH: loop header
LB: loop body
LE: loop exit
PB: predicated region body
PF: predicated region fallthrough
CT: control target
= control target key end

     0   :  { %s1879_s0 = inlined_call_operand.hbm [shape: f32[16,32], index: 0, kind: input, shape index: {}]   ;;  %s1880_s1 = inlined_call_operand.hbm [shape: f32[16,24], index: 1, kind: input, shape index: {}]   ;;  %s1881_s2 = inlined_call_operand.hbm [shape: f32[184,192], index: 2, kind: input, shape index: {}]   ;;  %s1882_s3 = inlined_call_operand.hbm [shape: f32[16,128], index: 3, kind: input, shape index: {}]   ;;  %s1883_s4 = inlined_call_operand.hbm [shape: f32[16,128], index: 4, kind: output, shape index: {}]  }
   0x1   :  { %1890 = sst [smem:[#allocation16_spill]] %s1879_s0 }
   0x2   :  { %1891 = sst [smem:[#allocation17_spill]] %s1881_s2 }
   0x3   :  { %9 = vsyncpa [#allocation3], 0 }
   0x4   :  { %11 = vsyncpa [#allocation3 + $0x1], 0 }
   0x5   :  { %12 = vsyncpa [#allocation6], 0 }
   0x6   :  { %14 = vsyncpa [#allocation6 + $0x1], 0 }
   0x7   :  { %15 = vsyncpa [#allocation9], 0 }
   0x8   :  { %17 = vsyncpa [#allocation9 + $0x1], 0 }
   0x9   :  { %18 = vsyncpa [#allocation4], 0 }
   0xa   :  { %20 = vsyncpa [#allocation4 + $0x1], 0  ;;  %s1569_s15 = smov 0   ;;  %s1571_s16 = smov 0  }
   0xb   :  { %s1573_s17 = smov 0   ;;  %s1575_s18 = smov 0  }
   0xc LB: > { %s1590_s19 = sadd.s32 4294967295, %s1529_s18   ;;  %s1105_s20 = sadd.s32 4294967294, %s1529_s18   ;;  %s1529_s18 = sphi %s1575_s18, %s1915_s18   ;;  %s1525_s17 = sphi %s1573_s17, %s1914_s17   ;;  %s1521_s16 = sphi %s1571_s16, %s1913_s16   ;;  %s1517_s15 = sphi %s1569_s15, %s1912_s15  }
   0xd   : > { %p46_p0 = scmp.ne.s32.totalorder %s1521_s16, %s1517_s15  ;;  %p1884_p1 = scmp.eq.s32.totalorder %s1590_s19, 0 }
   0xe   : > { %p149_p3 = scmp.eq.s32.totalorder %s1105_s20, 1  ;;  %p1106_p5 = scmp.ge.s32.totalorder %s1529_s18, 1 }
   0xf   : > { %p1599_p4 = por %p1884_p1, %p46_p0  ;;  %p156_p7 = scmp.lt.s32.totalorder %s1529_s18, 3 }
  0x10   : > { %p1604_p6 = por %p149_p3, %p46_p0  ;;  %s1531_s24 = smov [#allocation7]  }
  0x11   : > { %s1892_s21 = scalar_select %p1599_p4, 1, 0 }
  0x12   : > { %s1893_s22 = scalar_select %p1604_p6, 1, 0 }
  0x13   : > { %p1609_p8 = pnand %p1106_p5, %p156_p7  ;;  %s168_s25 = sshll.u32 %s1531_s24, 4  ;;  %s1613_s25 = int_to_ptr.vmem [resolvable:$true] %s168_s25 }
  0x14   : > { %s1625_s27 = sadd.s32 1, %s1529_s18   ;;  %s33_s28 = sadd.s32 1, %s1525_s17 }
  0x15   : > { %s1894_s23 = scalar_select %p1609_p8, 1, 0 }
  0x16   : > { %p1236_p9 = pneg %p1609_p8  ;;  %s30_s29 = ssub.s32 %s1529_s18, %s1625_s27 }
  0x17   : > { %s1896_s2 = sld [smem:[#allocation17_spill]] }
  0x18   : > { %p1620_p11 = pnand %p1236_p9, %p1884_p1 }
  0x1a   : > { %p1335_p13 = pneg %p1620_p11 }
  0x1d   : > { %s1333_s6 = scalar_lea.hbm %s1896_s2, 5888 }
  0x1e   : > { %p1334_p12 = scmp.ne.s32.totalorder %s1896_s2, %s1333_s6  ;;  %p1340_p5 = scmp.lt.u32.totalorder %s1333_s6, %s1896_s2 }
  0x20   : > { %p1336_p0 = pnand %p1335_p13, %p1334_p12 }
  0x22   : > { %p1337_p3 = pneg %p1336_p0 }
  0x24   : > { %p1342_p7 = pnand %p1340_p5, %p1337_p3 }
  0x26   : > { %1345 = shalt.err (!%p1342_p7)
}
  0x27   : > { %s1346_s11 = scalar_lea.vmem %s1613_s25, 5888  ;;  %p1354_p2 = scmp.lt.s32.totalorder %s1613_s25, %s1613_s25 }
  0x28   : > { %p1347_p9 = scmp.ne.s32.totalorder %s1613_s25, %s1346_s11  ;;  %p1355_p6 = scmp.lt.s32.totalorder %s1346_s11, %s1346_s11 }
  0x2a   : > { %p1349_p10 = pnand %p1347_p9, %p1335_p13  ;;  %p1356_p4 = por %p1355_p6, %p1354_p2 }
  0x2c   : > { %p1350_p1 = pneg %p1349_p10 }
  0x2e   : > { %p1357_p8 = pnand %p1356_p4, %p1350_p1 }
  0x30   : > { %1360 = shalt.err (!%p1357_p8)
}
  0x31   : > { %s1532_s12 = smov 256   ;;  %s1533_s13 = smov 16  }
  0x32   : > { %1239 = dma.hbm_to_vmem [thread:$0]  (!%p1620_p11), %s1896_s2, 5888, %s1613_s25, [#allocation6], %s1532_s12, %s1532_s12, %s1533_s13  }
  0x33   : > { %p31_p1 = scmp.eq.s32.totalorder %s30_s29, 0  ;;  %p40_p2 = scmp.ne.s32.totalorder %s1525_s17, %s1521_s16 }
  0x34   : > { %p41_p4 = scmp.eq.s32.totalorder %s1529_s18, 0  ;;  %p1255_p6 = scmp.lt.s32.totalorder %s1529_s18, 2 }
  0x35   : > { %s1656_s24 = scalar_select %p31_p1, %s1525_s17, %s33_s28  }
  0x36   : > { %p42_p8 = por %p41_p4, %p40_p2  ;;  %p1897_p10 = scmp.eq.s32.totalorder %s1590_s19, 1 }
  0x37   : > { %s1665_s5 = sand.u32 1, %s1525_s17   ;;  %s1668_s26 = sshll.u32 %s1529_s18, 7 }
  0x38   : > { %p1660_p12 = por %p1897_p10, %p40_p2  ;;  %s1671_s25 = sshll.u32 %s1665_s5, 3 }
  0x39   : > { %s1899_s0 = sld [smem:[#allocation16_spill]]  ;;  %s186_s7 = scalar_lea.vmem [#allocation2], %s1671_s25 }
  0x3a   : > { %s1898_s30 = scalar_select %p1660_p12, 1, 0 }
  0x3b   : > { %s193_s8 = sshll.u32 %s186_s7, 4  ;;  %p1680_p11 = pnand %p1255_p6, %p42_p8  ;;  %s1684_s8 = int_to_ptr.vmem [resolvable:$true] %s193_s8 }
  0x3c   : > { %s183_s11 = scalar_lea.sflag [#allocation3], %s1665_s5 }
  0x3d   : > { %s1900_s9 = scalar_select %p1680_p11, 1, 0 }
  0x3e   : > { %p1692_p0 = pneg %p1680_p11 }
  0x3f   : > { %s1677_s28 = scalar_lea.hbm %s1899_s0, %s1668_s26  ;;  %s1366_s29 = scalar_lea.hbm %s1899_s0, 256 }
  0x40   : > { %s1361_s12 = scalar_lea.hbm %s1677_s28, 128  ;;  %p1367_p7 = scmp.lt.u32.totalorder %s1677_s28, %s1899_s0 }
  0x41   : > { %p1362_p13 = scmp.ne.s32.totalorder %s1677_s28, %s1361_s12  ;;  %p1368_p9 = scmp.lt.u32.totalorder %s1366_s29, %s1361_s12 }
  0x42   : > { %p1370_p2 = scmp.lt.u32.totalorder %s1361_s12, %s1677_s28 }
  0x43   : > { %p1364_p3 = pnand %p1692_p0, %p1362_p13  ;;  %p1369_p1 = por %p1368_p9, %p1367_p7 }
  0x45   : > { %p1365_p5 = pneg %p1364_p3  ;;  %p1371_p4 = por %p1370_p2, %p1369_p1 }
  0x47   : > { %p1372_p6 = pnand %p1371_p4, %p1365_p5 }
  0x49   : > { %1375 = shalt.err (!%p1372_p6)
}
  0x4a   : > { %s1376_s10 = scalar_lea.vmem %s1684_s8, 128  ;;  %s1534_s14 = smov [#allocation2]  }
  0x4b   : > { %p1377_p8 = scmp.ne.s32.totalorder %s1684_s8, %s1376_s10  ;;  %s1381_s20 = sshll.u32 %s1534_s14, 4  ;;  %s1382_s20 = int_to_ptr.vmem [resolvable:$false] %s1381_s20 }
  0x4c   : > { %s1383_s6 = scalar_lea.vmem %s1382_s20, 256  ;;  %p1384_p3 = scmp.lt.s32.totalorder %s1684_s8, %s1382_s20 }
  0x4d   : > { %p1379_p10 = pnand %p1377_p8, %p1692_p0  ;;  %p1385_p12 = scmp.lt.s32.totalorder %s1383_s6, %s1376_s10 }
  0x4f   : > { %p1380_p13 = pneg %p1379_p10  ;;  %p1386_p7 = por %p1385_p12, %p1384_p3 }
  0x51   : > { %p1387_p9 = pnand %p1386_p7, %p1380_p13 }
  0x53   : > { %1390 = shalt.err (!%p1387_p9)
}
  0x54   : > { %1243 = dma.hbm_to_vmem [thread:$0]  (!%p1680_p11), %s1677_s28, 128, %s1684_s8, %s183_s11  }
  0x55   : > { %s1719_s7 = scalar_lea.hbm %s1880_s1, %s1668_s26  ;;  %s204_s10 = scalar_lea.vmem [#allocation5], %s1671_s25 }
  0x56   : > { %s211_s14 = sshll.u32 %s204_s10, 4  ;;  %s1902_s20 = sand.u32 1, %s1529_s18   ;;  %s212_s14 = int_to_ptr.vmem [resolvable:$true] %s211_s14 }
  0x57   : > { %s201_s6 = scalar_lea.sflag [#allocation6], %s1902_s20  ;;  %s1391_s0 = scalar_lea.hbm %s1719_s7, 128 }
  0x58   : > { %p1392_p12 = scmp.ne.s32.totalorder %s1719_s7, %s1391_s0  ;;  %s1396_s11 = scalar_lea.hbm %s1880_s1, 256 }
  0x59   : > { %p1397_p2 = scmp.lt.u32.totalorder %s1719_s7, %s1880_s1  ;;  %p1398_p4 = scmp.lt.u32.totalorder %s1396_s11, %s1391_s0 }
  0x5a   : > { %p1394_p5 = pnand %p1392_p12, %p1692_p0  ;;  %p1400_p8 = scmp.lt.u32.totalorder %s1391_s0, %s1719_s7 }
  0x5b   : > { %p1399_p6 = por %p1398_p4, %p1397_p2 }
  0x5c   : > { %p1395_p1 = pneg %p1394_p5 }
  0x5d   : > { %p1401_p10 = por %p1400_p8, %p1399_p6 }
  0x5f   : > { %p1402_p13 = pnand %p1401_p10, %p1395_p1 }
  0x61   : > { %1405 = shalt.err (!%p1402_p13)
}
  0x62   : > { %s1406_s10 = scalar_lea.vmem %s212_s14, 128  ;;  %s1535_s20 = smov [#allocation5]  }
  0x63   : > { %p1407_p3 = scmp.ne.s32.totalorder %s212_s14, %s1406_s10  ;;  %s1411_s2 = sshll.u32 %s1535_s20, 4  ;;  %s1412_s2 = int_to_ptr.vmem [resolvable:$false] %s1411_s2 }
  0x64   : > { %s1413_s28 = scalar_lea.vmem %s1412_s2, 256  ;;  %p1414_p12 = scmp.lt.s32.totalorder %s212_s14, %s1412_s2 }
  0x65   : > { %p1409_p7 = pnand %p1407_p3, %p1692_p0  ;;  %p1415_p5 = scmp.lt.s32.totalorder %s1413_s28, %s1406_s10 }
  0x67   : > { %p1410_p9 = pneg %p1409_p7  ;;  %p1416_p11 = por %p1415_p5, %p1414_p12 }
  0x69   : > { %p1417_p2 = pnand %p1416_p11, %p1410_p9 }
  0x6b   : > { %1420 = shalt.err (!%p1417_p2)
}
  0x6c   : > { %p1903_p4 = scmp.ne.s32.totalorder %s1900_s9, 0  ;;  %s1745_s11 = scalar_lea.hbm %s1882_s3, %s1668_s26 }
  0x6d   : > { %s222_s2 = scalar_lea.vmem [#allocation8], %s1671_s25  ;;  %s219_s29 = scalar_lea.sflag [#allocation9], %s1665_s5 }
  0x6e   : > { %1246 = dma.hbm_to_vmem [thread:$0]  (!%p1903_p4), %s1719_s7, 128, %s212_s14, %s201_s6  }
  0x6f   : > { %s229_s12 = sshll.u32 %s222_s2, 4  ;;  %s1421_s10 = scalar_lea.hbm %s1745_s11, 128  ;;  %s230_s12 = int_to_ptr.vmem [resolvable:$true] %s229_s12 }
  0x70   : > { %p1422_p11 = scmp.ne.s32.totalorder %s1745_s11, %s1421_s10  ;;  %s1426_s14 = scalar_lea.hbm %s1882_s3, 256 }
  0x71   : > { %p1427_p8 = scmp.lt.u32.totalorder %s1745_s11, %s1882_s3  ;;  %p1428_p10 = scmp.lt.u32.totalorder %s1426_s14, %s1421_s10 }
  0x72   : > { %p1424_p1 = pnand %p1422_p11, %p1692_p0  ;;  %p1430_p3 = scmp.lt.u32.totalorder %s1421_s10, %s1745_s11 }
  0x73   : > { %p1429_p13 = por %p1428_p10, %p1427_p8 }
  0x74   : > { %p1425_p6 = pneg %p1424_p1 }
  0x75   : > { %p1431_p7 = por %p1430_p3, %p1429_p13 }
  0x77   : > { %p1432_p9 = pnand %p1431_p7, %p1425_p6 }
  0x79   : > { %1435 = shalt.err (!%p1432_p9)
}
  0x7a   : > { %s1436_s5 = scalar_lea.vmem %s230_s12, 128  ;;  %s1536_s25 = smov [#allocation8]  }
  0x7b   : > { %p1437_p12 = scmp.ne.s32.totalorder %s230_s12, %s1436_s5  ;;  %s1441_s28 = sshll.u32 %s1536_s25, 4  ;;  %s1442_s28 = int_to_ptr.vmem [resolvable:$false] %s1441_s28 }
  0x7c   : > { %s1443_s0 = scalar_lea.vmem %s1442_s28, 256  ;;  %p1444_p11 = scmp.lt.s32.totalorder %s230_s12, %s1442_s28 }
  0x7d   : > { %p1439_p5 = pnand %p1437_p12, %p1692_p0  ;;  %p1445_p1 = scmp.lt.s32.totalorder %s1443_s0, %s1436_s5 }
  0x7f   : > { %p1440_p2 = pneg %p1439_p5  ;;  %p1446_p4 = por %p1445_p1, %p1444_p11 }
  0x81   : > { %p1447_p8 = pnand %p1446_p4, %p1440_p2 }
  0x83   : > { %1450 = shalt.err (!%p1447_p8)
}
  0x84   : > { %p1904_p10 = scmp.ne.s32.totalorder %s1900_s9, 0  ;;  %p1905_p6 = scmp.ne.s32.totalorder %s1894_s23, 0 }
  0x85   : > { %s1769_s13 = sand.u32 (!%p1905_p6), 1, %s1521_s16   ;;  %p1906_p0 = scmp.ne.s32.totalorder (!%p1905_p6), %s1892_s21, 0 }
  0x86   : > { %1249 = dma.hbm_to_vmem [thread:$0]  (!%p1904_p10), %s1745_s11, 128, %s230_s12, %s219_s29  }
  0x87   : > { %238 = sbr.rel (%p1905_p6) target bundleno = 1900 (0x76c), region = 36  ;;  %s1772_s8 = sshll.u32 (!%p1905_p6), %s1769_s13, 3 }
  0x88   : > { %s241_s2 = scalar_lea.sflag (!%p1905_p6), [#allocation3], %s1769_s13  ;;  %s244_s10 = scalar_lea.vmem (!%p1905_p6), [#allocation2], %s1772_s8 }
  0x8e   : > { %1496 = dma.done.wait (%p1906_p0), %s241_s2, 128  }
  0x8f   : > { %1498 = vsyncadd (%p1906_p0), %s241_s2, 4294967168  ;;  %s249_s23 = sand.u32 1, %s1590_s19   ;;  %s253_s11 = scalar_lea.vmem [#allocation5], %s1772_s8 }
  0x90   : > { %s250_s9 = scalar_lea.sflag [#allocation6], %s249_s23 }
  0x91   : > { %1500 = dma.done.wait (%p1906_p0), %s250_s9, 128  }
  0x92   : > { %1502 = vsyncadd (%p1906_p0), %s250_s9, 4294967168  ;;  %p1907_p4 = scmp.eq.s32.totalorder %s1590_s19, 0 }
  0x94   : > { %1504 = dma.done.wait (%p1907_p4), [#allocation6], 5888   ;;  %p1908_p13 = pmov %p1907_p4 }
  0x95   : > { %s263_s12 = scalar_lea.sflag [#allocation9], %s1769_s13  ;;  %s266_s29 = scalar_lea.vmem [#allocation8], %s1772_s8 }
  0x96   : > { %1506 = vsyncadd (%p1908_p13), [#allocation6], 4294961408 }
  0x97   : > { %1508 = dma.done.wait (%p1906_p0), %s263_s12, 128  }
  0x98   : > { %1510 = vsyncadd (%p1906_p0), %s263_s12, 4294967168  ;;  %v1537_v0 = vmov 0.0   ;;  %v302_v1 = vld [vmem:[#allocation7 + $0x8] sm:$0xff]  ;;  %v304_v2 = vld [vmem:[#allocation7 + $0x18] sm:$0xff]  ;;  %vm350_vm0 = vcmask 261120   ;;  %vm426_vm1 = vcmask 64512   ;;  %v340_v17 = vlaneseq }
  0x99   : > { %418 = vmatprep.mubr.f32.mxu0 %v1537_v0  ;;  %591 = vmatprep.mubr.f32.mxu1 %v1537_v0  ;;  %v301_v3 = vld [vmem:[#allocation7] sm:$0xff]  ;;  %v1165_v4 = vpack.c.bf16 %v304_v2, %v302_v1  ;;  %v303_v5 = vld [vmem:[#allocation7 + $0x10] sm:$0xff]  ;;  %v306_v6 = vld [vmem:[#allocation7 + $0x28] sm:$0xff]  ;;  %s1538_s21 = smov 64   ;;  %s1539_s20 = smov 120   ;;  %vm600_vm2 = vcmask 523264  }
  0x9a   : > { %v308_v7 = vld [vmem:[#allocation7 + $0x38] sm:$0xff]  ;;  %v1167_v8 = vpack.c.bf16 %v303_v5, %v301_v3  ;;  %v305_v10 = vld [vmem:[#allocation7 + $0x20] sm:$0xff]  ;;  %v307_v11 = vld [vmem:[#allocation7 + $0x30] sm:$0xff]  ;;  %v341_v18 = vshrl.u32 %v340_v17, 7  ;;  %s1540_s7 = smov 112   ;;  %vm1542_vm3 = vmmov 0  }
  0x9b   : > { %v1169_v9 = vpack.c.bf16 %v308_v7, %v306_v6  ;;  %1166 = vmatprep.subr.bf16.mxu0 %v1165_v4  ;;  %v310_v12 = vld [vmem:[#allocation7 + $0x48] sm:$0xff]  ;;  %v1171_v13 = vpack.c.bf16 %v307_v11, %v305_v10  ;;  %v309_v14 = vld [vmem:[#allocation7 + $0x40] sm:$0xff]  ;;  %v1803_v16 = vld [vmem:[%s253_s11] sm:$0xff]  ;;  %s1134_s14 = sshll.u32 %s1590_s19, 7  ;;  %s300_s6 = scalar_lea.vmem [#allocation10], %s1772_s8 }
  0x9c   : > { %1168 = vmatpush1.bf16.msra.mxu0 %v1167_v8  ;;  %527 = vmatprep.subr.mxu1 %v310_v12  ;;  %v338_v15 = vld [vmem:[%s244_s10] sm:$0xff]  ;;  %v342_v19 = vsub.s32 0, %v341_v18  ;;  %v312_v20 = vld [vmem:[#allocation7 + $0x50] ss:$8 sm:$0x3]  ;;  %v346_v32 = vsub.s32 1, %v341_v18  ;;  %s1835_s28 = scalar_lea.hbm %s1883_s4, %s1134_s14 }
  0x9d   : > { %1170 = vmatprep.subr.bf16.mxu0 %v1169_v9  ;;  %528 = vmatpush1.msra.mxu1 %v309_v14  ;;  %v314_v28 = vld [vmem:[#allocation7 + $0x68] sm:$0xff]  ;;  %v316_v29 = vld [vmem:[#allocation7 + $0x78] sm:$0xff]  ;;  %v313_v42 = vld [vmem:[#allocation7 + $0x60] sm:$0xff]  ;;  %s980_s26 = sshll.u32 %s300_s6, 4  ;;  %s967_s0 = scalar_lea.sflag [#allocation4], %s1769_s13  ;;  %s1837_s26 = int_to_ptr.vmem [resolvable:$true] %s980_s26 }
  0x9e   : > { %v343_v21 = vrot.slane %v312_v20, %v342_v19  ;;  %v1173_v30 = vpack.c.bf16 %v316_v29, %v314_v28  ;;  %v347_v34 = vrot.slane %v312_v20, %v346_v32  ;;  %v315_v43 = vld [vmem:[#allocation7 + $0x70] sm:$0xff]  ;;  %v318_v46 = vld [vmem:[#allocation7 + $0x88] sm:$0xff]  ;;  %v320_v47 = vld [vmem:[#allocation7 + $0x98] sm:$0xff]  ;;  %s1451_s2 = scalar_lea.vmem %s1837_s26, 128  ;;  %p1909_p7 = scmp.ne.s32.totalorder %s1898_s30, 0 }
  0x9f   : > { %v1175_v49 = vpack.c.bf16 %v315_v43, %v313_v42  ;;  %v1177_v50 = vpack.c.bf16 %v320_v47, %v318_v46  ;;  %v317_v51 = vld [vmem:[#allocation7 + $0x80] sm:$0xff]  ;;  %v319_v52 = vld [vmem:[#allocation7 + $0x90] sm:$0xff]  ;;  %v322_v54 = vld [vmem:[#allocation7 + $0xa8] sm:$0xff]  ;;  %p1452_p3 = scmp.ne.s32.totalorder %s1837_s26, %s1451_s2  ;;  %s1543_s19 = smov [#allocation10]  }
  0xa0   : > { %1172 = vmatpush1.bf16.msra.mxu0 %v1171_v13  ;;  %1174 = vmatprep.subr.bf16.mxu1 %v1173_v30  ;;  %v324_v55 = vld [vmem:[#allocation7 + $0xb8] sm:$0xff]  ;;  %v1179_v56 = vpack.c.bf16 %v319_v52, %v317_v51  ;;  %v321_v58 = vld [vmem:[#allocation7 + $0xa0] sm:$0xff]  ;;  %v323_v59 = vld [vmem:[#allocation7 + $0xb0] sm:$0xff]  ;;  %s1455_s8 = sshll.u32 %s1543_s19, 4  ;;  %s1456_s8 = int_to_ptr.vmem [resolvable:$false] %s1455_s8 }
  0xa1   : > { %430 = vmatprep.subr.mxu0 %v310_v12  ;;  %v1181_v57 = vpack.c.bf16 %v324_v55, %v322_v54  ;;  %v326_v60 = vld [vmem:[#allocation7 + $0xc8] sm:$0xff]  ;;  %v328_v61 = vld [vmem:[#allocation7 + $0xd8] sm:$0xff]  ;;  %v1183_v62 = vpack.c.bf16 %v323_v59, %v321_v58  ;;  %v325_v1 = vld [vmem:[#allocation7 + $0xc0] sm:$0xff]  ;;  %v945_v55 = vand.u32 127, %v340_v17  ;;  %p1453_p9 = pnand %p1452_p3, %p1909_p7  ;;  %s1457_s10 = scalar_lea.vmem %s1456_s8, 256 }
  0xa2   : > { %v1185_v63 = vpack.c.bf16 %v328_v61, %v326_v60  ;;  %v327_v2 = vld [vmem:[#allocation7 + $0xd0] sm:$0xff]  ;;  %v331_v29 = vld [vmem:[#allocation7 + $0x100] sm:$0xff]  ;;  %p1458_p5 = scmp.lt.s32.totalorder %s1837_s26, %s1456_s8  ;;  %p1459_p2 = scmp.lt.s32.totalorder %s1457_s10, %s1451_s2 }
  0xa3   : > { %1121 = vmatmul.mubr.msk.f32.vlgmr.msra.gmra.mrb[0].mxu0 %vm350_vm0, %v338_v15  ;;  %v1187_v5 = vpack.c.bf16 %v327_v2, %v325_v1  ;;  %v330_v28 = vld [vmem:[#allocation7 + $0xf0] sm:$0xff]  ;;  %vm962_vm6 = vcmp.eq.s32.totalorder %v945_v55, 127  ;;  %p1454_p12 = pneg %p1453_p9 }
  0xa4   : > { %431 = vmatpush1.msra.mxu0 %v309_v14  ;;  %494 = vmatprep.mubr.f32.mxu0 %v1537_v0  ;;  %v332_v32 = vld [vmem:[#allocation7 + $0x110] sm:$0xff]  ;;  %p1460_p11 = por %p1459_p2, %p1458_p5 }
  0xa5   : > { %701 = vmatprep.subr.mxu0 %v310_v12  ;;  %v940_v51 = vld [vmem:[%s266_s29] sm:$0xff] }
  0xa6   : > { %p1461_p1 = pnand %p1460_p11, %p1454_p12 }
  0xa7   : > { %1122 = vmatmul.mubr.msk.f32.vlgmr.msra.gmra.mrb[2].mxu0 %vm426_vm1, %v1803_v16 }
  0xa8   : > { %702 = vmatpush1.msra.mxu0 %v309_v14  ;;  %765 = vmatprep.mubr.f32.mxu0 %v1537_v0 }
  0xa9   : > { %1190 = vmatprep.subr.bf16.mxu0 %v1173_v30  ;;  %v1541_v30 = vmov 0.0|0.0  }
 0x176   : > { %v420_v22 = vpop.f32.mrb[0].mxu0 }
 0x177   : > { %v422_v23 = vpop.f32.mrb[1].mxu0  ;;  %v1809_v24 = vadd.f32 %v420_v22, %v343_v21 }
 0x178   : > { %v423_v35 = vadd.f32 %v422_v23, %v347_v34  ;;  %v333_v34 = vld [vmem:[#allocation7 + $0x120] sm:$0xff] }
 0x17a   : > { %v496_v25 = vpop.f32.mrb[2].mxu0 }
 0x17b   : > { %v501_v26 = vadd.f32 %v496_v25, %v1809_v24  ;;  %v498_v27 = vpop.f32.mrb[3].mxu0 }
 0x17c   : > { %v502_v36 = vadd.f32 %v498_v27, %v423_v35  ;;  %v329_v27 = vld [vmem:[#allocation7 + $0xe0] sm:$0xff] }
 0x17d   : > { %1299 = vtanh.f32 %v501_v26  ;;  %v1123_v33 = vmul.f32 -1.442695, %v501_v26 }
 0x17e   : > { %v1124_v37 = vmul.f32 -1.442695, %v502_v36 }
 0x17f   : > { %1301 = vpow2.f32 %v1123_v33  ;;  %v1209_v33 = vpack.c.bf16 %v332_v32, %v331_v29 }
 0x180   : > { %1303 = vpow2.f32 %v1124_v37  ;;  %v335_v37 = vld [vmem:[#allocation7 + $0x140] sm:$0xff] }
 0x187   : > { %v1300_v31 = vpop.eup %1299 }
 0x188   : > { %511 = vrot.lane.b32.xlu0 %v1300_v31, %s1538_s21  ;;  %v1206_v31 = vpack.c.bf16 %v330_v28, %v329_v27 }
 0x189   : > { %v1302_v38 = vpop.eup %1301 }
 0x18a   : > { %v506_v39 = vadd.f32 1.0, %v1302_v38  ;;  %v1304_v40 = vpop.eup %1303  ;;  %v336_v38 = vld [vmem:[#allocation7 + $0x150] sm:$0xff] }
 0x18b   : > { %v518_v41 = vadd.f32 1.0, %v1304_v40 }
 0x18c   : > { %523 = vrot.lane.b32.xlu0 %v1803_v16, %s1539_s20  ;;  %1305 = vrcp.f32 %v506_v39  ;;  %v1215_v39 = vpack.c.bf16 %v336_v38, %v335_v37 }
 0x18d   : > { %1307 = vrcp.f32 %v518_v41 }
 0x196   : > { %v1306_v44 = vpop.eup %1305 }
 0x197   : > { %v1308_v3 = vpop.eup %1307 }
 0x1fa   : > { %v512_v45 = vpop.permute.xlu0 %511 }
 0x1fb   : > { %v514_v48 = vmul.f32 %v1306_v44, %v512_v45 }
 0x1fd   : > { %1309 = vtanh.f32 %v514_v48 }
 0x1fe   : > { %v524_v53 = vpop.permute.xlu0 %523 }
 0x1ff   : > { %1125 = vmatmul.mubr.msk.f32.vlgmr.msra.gmra.mrb[0].mxu1 %vm426_vm1, %v524_v53 }
 0x200   : > { %1176 = vmatpush1.bf16.msra.mxu1 %v1175_v49  ;;  %668 = vmatprep.mubr.f32.mxu1 %v1537_v0 }
 0x201   : > { %1178 = vmatprep.subr.bf16.mxu1 %v1177_v50 }
 0x204   : > { %1180 = vmatpush1.bf16.msra.mxu1 %v1179_v56 }
 0x205   : > { %1182 = vmatprep.subr.bf16.mxu1 %v1181_v57 }
 0x207   : > { %v1310_v4 = vpop.eup %1309 }
 0x208   : > { %1184 = vmatpush1.bf16.msra.mxu1 %v1183_v62  ;;  %v522_v6 = vmul.f32 %v1310_v4, %v1308_v3 }
 0x209   : > { %1186 = vmatprep.subr.bf16.mxu1 %v1185_v63 }
 0x20c   : > { %1188 = vmatpush1.bf16.msra.mxu1 %v1187_v5 }
 0x20d   : > { %1205 = vmatprep.subr.bf16.mxu1 %v1541_v30 }
 0x20f   : > { %1126 = vmatmul.mubr.msk.f32.vlgmr.msra.gmra.mrb[0].mxu1 %vm600_vm2, %v522_v6 }
 0x210   : > { %1207 = vmatpush3.bf16.msra.mxu1 %v1206_v31  ;;  %1162 = vmatprep.mubr.msk.f32.mxu1 %vm1542_vm3, %v1537_v0 }
 0x211   : > { %1208 = vmatprep.subr.bf16.mxu1 %v1541_v30 }
 0x214   : > { %1210 = vmatpush3.bf16.msra.mxu1 %v1209_v33 }
 0x215   : > { %1211 = vmatprep.subr.bf16.mxu1 %v1541_v30 }
 0x2e2   : > { %v670_v7 = vpop.f32.mrb[0].mxu1 }
 0x2e3   : > { %v1217_v8 = vadd.f32 %v670_v7, %v1809_v24  ;;  %v672_v9 = vpop.f32.mrb[1].mxu1 }
 0x2e4   : > { %v1218_v12 = vadd.f32 %v672_v9, %v423_v35  ;;  %v334_v35 = vld [vmem:[#allocation7 + $0x130] sm:$0xff] }
 0x2e5   : > { %1311 = vtanh.f32 %v1217_v8  ;;  %v1127_v11 = vmul.f32 -1.442695, %v1217_v8  ;;  %v1212_v36 = vpack.c.bf16 %v334_v35, %v333_v34 }
 0x2e6   : > { %v1128_v13 = vmul.f32 -1.442695, %v1218_v12 }
 0x2e7   : > { %1313 = vpow2.f32 %v1127_v11  ;;  %1213 = vmatpush3.bf16.msra.mxu1 %v1212_v36 }
 0x2e8   : > { %1315 = vpow2.f32 %v1128_v13  ;;  %1214 = vmatprep.subr.bf16.mxu1 %v1541_v30 }
 0x2eb   : > { %1216 = vmatpush3.bf16.msra.mxu1 %v1215_v39 }
 0x2ef   : > { %v1312_v10 = vpop.eup %1311 }
 0x2f0   : > { %685 = vrot.lane.b32.xlu1 %v1312_v10, %s1538_s21 }
 0x2f1   : > { %v1314_v14 = vpop.eup %1313 }
 0x2f2   : > { %v680_v15 = vadd.f32 1.0, %v1314_v14  ;;  %v1316_v18 = vpop.eup %1315 }
 0x2f3   : > { %v692_v19 = vadd.f32 1.0, %v1316_v18 }
 0x2f4   : > { %697 = vrot.lane.b32.xlu1 %v1803_v16, %s1540_s7  ;;  %1317 = vrcp.f32 %v680_v15 }
 0x2f5   : > { %1319 = vrcp.f32 %v692_v19 }
 0x2fe   : > { %v1318_v20 = vpop.eup %1317 }
 0x2ff   : > { %v1320_v16 = vpop.eup %1319 }
 0x362   : > { %v686_v21 = vpop.permute.xlu1 %685 }
 0x363   : > { %v688_v22 = vmul.f32 %v1318_v20, %v686_v21 }
 0x365   : > { %1321 = vtanh.f32 %v688_v22 }
 0x366   : > { %v698_v23 = vpop.permute.xlu1 %697 }
 0x367   : > { %1129 = vmatmul.mubr.msk.f32.vlgmr.msra.gmra.mrb[4].mxu0 %vm426_vm1, %v698_v23 }
 0x368   : > { %1192 = vmatpush1.bf16.msra.mxu0 %v1175_v49  ;;  %839 = vmatprep.mubr.f32.mxu0 %v1537_v0 }
 0x369   : > { %1194 = vmatprep.subr.bf16.mxu0 %v1177_v50 }
 0x36c   : > { %1196 = vmatpush1.bf16.msra.mxu0 %v1179_v56 }
 0x36d   : > { %1198 = vmatprep.subr.bf16.mxu0 %v1181_v57 }
 0x36f   : > { %v1322_v25 = vpop.eup %1321 }
 0x370   : > { %1200 = vmatpush1.bf16.msra.mxu0 %v1183_v62  ;;  %v696_v26 = vmul.f32 %v1322_v25, %v1320_v16 }
 0x371   : > { %1202 = vmatprep.subr.bf16.mxu0 %v1185_v63 }
 0x374   : > { %1204 = vmatpush1.bf16.msra.mxu0 %v1187_v5 }
 0x377   : > { %1130 = vmatmul.mubr.msk.f32.vlgmr.msra.gmra.mrb[4].mxu0 %vm600_vm2, %v696_v26 }
 0x44a   : > { %v841_v40 = vpop.f32.mrb[4].mxu0 }
 0x44b   : > { %v1219_v41 = vadd.f32 %v841_v40, %v1809_v24  ;;  %v843_v42 = vpop.f32.mrb[5].mxu0  ;;  %v337_v24 = vld [vmem:[#allocation7 + $0x160] ss:$0 sm:$0xff] }
 0x44d   : > { %1323 = vtanh.f32 %v1219_v41  ;;  %v1131_v44 = vmul.f32 -1.442695, %v1219_v41 }
 0x44f   : > { %1325 = vpow2.f32 %v1131_v44 }
 0x457   : > { %v1324_v43 = vpop.eup %1323 }
 0x458   : > { %854 = vrot.lane.b32.xlu0 %v1324_v43, %s1538_s21 }
 0x459   : > { %v1326_v45 = vpop.eup %1325 }
 0x45a   : > { %v849_v46 = vadd.f32 1.0, %v1326_v45 }
 0x45c   : > { %1327 = vrcp.f32 %v849_v46 }
 0x466   : > { %v1328_v47 = vpop.eup %1327 }
 0x4ca   : > { %v855_v48 = vpop.permute.xlu0 %854 }
 0x4cb   : > { %v857_v49 = vmul.f32 %v1328_v47, %v855_v48 }
 0x4cd   : > { %1163 = vmatmul.mubr.msk.f32.vlgmr.msra.gmra.mrb[2].mxu1 %vm600_vm2, %v857_v49 }
 0x5a0   : > { %v927_v50 = vpop.f32.mrb[2].mxu1 }
 0x5a1   : > { %v928_v52 = vadd.f32 %v927_v50, %v337_v24  ;;  %v1164_v0 = vpop.f32.mrb[3].mxu1 }
 0x5a3   : > { %931 = vmax.xlane.f32.xlu0 %v928_v52  ;;  %v941_v53 = vadd.f32 %v940_v51, %v928_v52 }
 0x5a5   : > { %942 = vmax.xlane.f32.xlu1 %v941_v53 }
 0x630   : > { %v932_v54 = vpop.xlane.xlu0 %931 }
 0x631   : > { %v933_v56 = vsub.f32 %v928_v52, %v932_v54 }
 0x632   : > { %v943_v57 = vpop.xlane.xlu1 %942 }
 0x633   : > { %v934_v58 = vmul.f32 1.442695, %v933_v56  ;;  %vm946_vm4 = vcmp.ge.f32.partialorder %v941_v53, %v943_v57 }
 0x634   : > { %v947_v59 = vsel %vm946_vm4, %v945_v55, 128 }
 0x635   : > { %1329 = vpow2.f32 %v934_v58  ;;  %v949_v60 = vshra.s32 %v947_v59, 16  ;;  %v948_v63 = vand.u32 65535, %v947_v59 }
 0x637   : > { %v951_v61 = vcvt.s32.f32 %v949_v60  ;;  %v950_v2 = vcvt.s32.f32 %v948_v63 }
 0x639   : > { %952 = vmin.xlane.f32.xlu0 %v951_v61 }
 0x63f   : > { %v1330_v62 = vpop.eup %1329 }
 0x640   : > { %936 = vadd.xlane.f32.xlu1 %v1330_v62 }
 0x6c6   : > { %v953_v1 = vpop.xlane.xlu0 %952 }
 0x6c7   : > { %vm954_vm5 = vcmp.eq.f32.partialorder %v951_v61, %v953_v1  ;;  %v959_v4 = vcvt.f32.s32 %v953_v1 }
 0x6c8   : > { %v955_v3 = vsel %vm954_vm5, %v950_v2, inf }
 0x6c9   : > { %956 = vmin.xlane.f32.xlu0 %v955_v3  ;;  %v960_v6 = vshll.u32 %v959_v4, 16 }
 0x6cd   : > { %v937_v17 = vpop.xlane.xlu1 %936 }
 0x6ce   : > { %1331 = vrcp.f32 %v937_v17 }
 0x6d8   : > { %v1332_v8 = vpop.eup %1331 }
 0x6d9   : > { %v939_v10 = vmul.f32 %v1332_v8, %v1330_v62 }
 0x756   : > { %v957_v5 = vpop.xlane.xlu0 %956 }
 0x757   : > { %v958_v7 = vcvt.f32.s32 %v957_v5 }
 0x759   : > { %v961_v9 = vadd.s32 %v960_v6, %v958_v7 }
 0x75b   : > { %v963_v11 = vcvt.s32.f32 %v961_v9 }
 0x75d   : > { %v964_v12 = vsel %vm962_vm6, %v963_v11, %v939_v10 }
 0x75e   : > { %965 = vst [vmem:[%s300_s6] sm:$0xff] %v964_v12 }
 0x75f   : > { %1464 = shalt.err (!%p1461_p1)
}
 0x760   : > { %s1465_s13 = scalar_lea.hbm %s1835_s28, 128  ;;  %s1469_s11 = scalar_lea.hbm %s1883_s4, 256 }
 0x761   : > { %p1466_p8 = scmp.ne.s32.totalorder %s1835_s28, %s1465_s13  ;;  %p1470_p0 = scmp.lt.u32.totalorder %s1835_s28, %s1883_s4 }
 0x762   : > { %p1471_p4 = scmp.lt.u32.totalorder %s1469_s11, %s1465_s13  ;;  %p1473_p3 = scmp.lt.u32.totalorder %s1465_s13, %s1835_s28 }
 0x763   : > { %p1467_p10 = pnand %p1466_p8, %p1909_p7 }
 0x764   : > { %p1472_p13 = por %p1471_p4, %p1470_p0 }
 0x765   : > { %p1468_p6 = pneg %p1467_p10 }
 0x766   : > { %p1474_p9 = por %p1473_p3, %p1472_p13 }
 0x768   : > { %p1475_p12 = pnand %p1474_p9, %p1468_p6 }
 0x76a   : > { %1478 = shalt.err (!%p1475_p12)
}
 0x76b   : > { %1234 = dma.vmem_to_hbm [thread:$0]  (%p1909_p7), %s1837_s26, 128, %s1835_s28, %s967_s0  }
 0x76c PF: > { %s992_s21 = sand.u32 1, %s1517_s15   ;;  %p1910_p5 = scmp.ne.s32.totalorder %s1893_s22, 0 }
 0x76d   : > { %p1911_p2 = scmp.ge.s32.totalorder %s1529_s18, 2  ;;  %s993_s20 = scalar_lea.sflag [#allocation4], %s992_s21 }
 0x76f   : > { %p1251_p11 = pnand %p1911_p2, %p1910_p5 }
 0x771   : > { %1512 = dma.done.wait (!%p1251_p11), %s993_s20, 128  }
 0x772   : > { %1514 = vsyncadd (!%p1251_p11), %s993_s20, 4294967168  ;;  %p23_p1 = scmp.ge.s32.totalorder %s1625_s27, 4   ;;  %s1912_s15 = smov %s1521_s16 }
 0x773   : > { %s1913_s16 = smov %s1525_s17  ;;  %s1914_s17 = smov %s1656_s24 }
 0x774   : > { %s1915_s18 = smov %s1625_s27  ;;  %25 = sbr.rel (!%p23_p1) target bundleno = 12 (0xc), region = 112 }
 0x77b   :  { %998 = vsyncpa [#allocation3], 1 }
 0x77c   :  { %1000 = vsyncpa [#allocation3 + $0x1], 1 }
 0x77d   :  { %1001 = vsyncpa [#allocation6], 1 }
 0x77e   :  { %1003 = vsyncpa [#allocation6 + $0x1], 1 }
 0x77f   :  { %1004 = vsyncpa [#allocation9], 1 }
 0x780   :  { %1006 = vsyncpa [#allocation9 + $0x1], 1 }
 0x781   :  { %1007 = vsyncpa [#allocation4], 1 }
 0x782   :  { %1009 = vsyncpa [#allocation4 + $0x1], 1 }

</bundles_post_ra>
